<compile_context>
chip_gen: v5e
topology: v5e:2x2
jax: 0.10.0
libtpu: 0.0.40
codegen_flags: <defaults>
</compile_context>

<pallas_src>
import functools

import jax
import jax.numpy as jnp
from jax import lax
from jax.experimental import pallas as pl
from jax.experimental.pallas import tpu as pltpu

_GROWTH = 32
_TM_CAP = 1024


def _round_up(x, m):
    return (x + m - 1) // m * m


def _pick_vmem_limit():
    # ~3/4 of physical VMEM: 96 MiB on v5e/v6e (128 MiB), 48 MiB on v7x (64 MiB).
    try:
        cap = int(pltpu.get_tpu_info().vmem_capacity_bytes)
    except Exception:
        cap = 64 * 1024 * 1024
    return max(32 * 1024 * 1024, min(cap * 3 // 4, 96 * 1024 * 1024))


_VMEM_LIMIT = _pick_vmem_limit()


# ---------------------------------------------------------------------------
# Kernel 1: fused matmul   out = post(pre(x) @ W)
#   pre  : per-K  scale/shift + ReLU   (DenseNet norm1+ReLU, eval-mode BN)
#   post : per-N  scale/shift (+ReLU)  (norm0 / norm2 / classifier bias)
# ---------------------------------------------------------------------------
def _fused_matmul_kernel(x_ref, isc_ref, ish_ref, w_ref, osc_ref, osh_ref,
                         o_ref, *, pre, post_affine, post_relu):
    x = x_ref[...]
    if pre:
        h = x.astype(jnp.float32) * isc_ref[...] + ish_ref[...]
        h = jnp.maximum(h, 0.0).astype(jnp.bfloat16)
    else:
        h = x.astype(jnp.bfloat16)
    y = jnp.dot(h, w_ref[...], preferred_element_type=jnp.float32)
    if post_affine:
        y = y * osc_ref[...] + osh_ref[...]
    if post_relu:
        y = jnp.maximum(y, 0.0)
    o_ref[...] = y.astype(o_ref.dtype)


@functools.partial(jax.jit,
                   static_argnames=("pre", "post_affine", "post_relu", "out_dtype"))
def fused_matmul(x, w, isc=None, ish=None, osc=None, osh=None, *, pre=False,
                 post_affine=False, post_relu=False, out_dtype=jnp.bfloat16):
    """(M, K) @ (K, Np) with fused per-K input affine(+ReLU) and per-N output
    affine(+ReLU).  Np must be a multiple of 128 (weights are pre-padded).
    No M padding / output slicing: ragged last M tile is handled by Pallas."""
    M, K = x.shape
    Kw, Np = w.shape
    assert Kw == K and Np % 128 == 0
    if isc is None:
        isc = jnp.ones((1, K), jnp.float32)
    if ish is None:
        ish = jnp.zeros((1, K), jnp.float32)
    if osc is None:
        osc = jnp.ones((1, Np), jnp.float32)
    if osh is None:
        osh = jnp.zeros((1, Np), jnp.float32)

    TM = M if M <= _TM_CAP else _TM_CAP        # full-dim block or 1024-row tiles
    if Np <= 256:
        TN = Np
    elif Np % 256 == 0:
        TN = 256
    else:
        TN = 128

    grid = (pl.cdiv(M, TM), Np // TN)
    return pl.pallas_call(
        functools.partial(_fused_matmul_kernel, pre=pre,
                          post_affine=post_affine, post_relu=post_relu),
        grid=grid,
        in_specs=[
            pl.BlockSpec((TM, K), lambda i, j: (i, 0)),
            pl.BlockSpec((1, K), lambda i, j: (0, 0)),
            pl.BlockSpec((1, K), lambda i, j: (0, 0)),
            pl.BlockSpec((K, TN), lambda i, j: (0, j)),
            pl.BlockSpec((1, TN), lambda i, j: (0, j)),
            pl.BlockSpec((1, TN), lambda i, j: (0, j)),
        ],
        out_specs=pl.BlockSpec((TM, TN), lambda i, j: (i, j)),
        out_shape=jax.ShapeDtypeStruct((M, Np), out_dtype),
        compiler_params=pltpu.CompilerParams(
            dimension_semantics=("parallel", "parallel"),
            vmem_limit_bytes=_VMEM_LIMIT),
    )(x, isc, ish, w, osc, osh)


# ---------------------------------------------------------------------------
# Kernel 2: direct 3x3 stride-1 pad-1 conv (no im2col slab in HBM).
# The spatially padded NHWC map is flattened to rows of stride Wp8 (= W+2 rounded
# up to a multiple of 8).  In-kernel, the +1 / +2 row-shifted copies are built once
# with pltpu.roll and lane-concatenated -> (MG, 3C); each of the 3 row offsets
# di*Wp8 is then one sublane-aligned (mo, 3C) x (3C, Op) matmul, accumulated as a
# value chain (no VMEM-scratch RMW).
# ---------------------------------------------------------------------------
def _conv3x3_kernel(x_ref, w_ref, o_ref, *, row_stride, mo):
    x0 = x_ref[0]                                     # (MG, C) bf16
    mg = x0.shape[0]
    x1 = pltpu.roll(x0, shift=mg - 1, axis=0)          # x1[r] = x0[r + 1]
    x2 = pltpu.roll(x0, shift=mg - 2, axis=0)          # x2[r] = x0[r + 2]
    xw = jnp.concatenate([x0, x1, x2], axis=-1)        # (MG, 3C), lanes = dj*C + c

    acc = jnp.dot(xw[0:mo], w_ref[0],
                  preferred_element_type=jnp.float32)
    acc = acc + jnp.dot(xw[row_stride:row_stride + mo], w_ref[1],
                        preferred_element_type=jnp.float32)
    acc = acc + jnp.dot(xw[2 * row_stride:2 * row_stride + mo], w_ref[2],
                        preferred_element_type=jnp.float32)
    o_ref[0] = acc.astype(o_ref.dtype)


@functools.partial(jax.jit, static_argnames=("o_real",))
def conv3x3_direct(h, w3, *, o_real):
    """h: (B, H, W, C) bf16 (already BN+ReLU'd); w3: (3, 3*C, Op) bf16.
    Returns the 3x3 / stride-1 / pad-1 conv as (B, H, W, o_real) bf16."""
    B, H, W, C = h.shape
    three, K3, Op = w3.shape
    assert three == 3 and K3 == 3 * C
    Wp8 = _round_up(W + 2, 8)                          # padded, 8-aligned row stride
    hp = jnp.pad(h, ((0, 0), (1, 1), (1, Wp8 - W - 1), (0, 0)))
    MG = (H + 2) * Wp8
    g = hp.reshape(B, MG, C)
    mo = H * Wp8                                       # output rows (padded-width coords)

    # TODO(synk): add row tiling with a 1-row halo for very large maps (v7x VMEM).
    out = pl.pallas_call(
        functools.partial(_conv3x3_kernel, row_stride=Wp8, mo=mo),
        grid=(B,),
        in_specs=[
            pl.BlockSpec((1, MG, C), lambda b: (b, 0, 0)),
            pl.BlockSpec((3, K3, Op), lambda b: (0, 0, 0)),
        ],
        out_specs=pl.BlockSpec((1, mo, Op), lambda b: (b, 0, 0)),
        out_shape=jax.ShapeDtypeStruct((B, mo, Op), jnp.bfloat16),
        compiler_params=pltpu.CompilerParams(
            dimension_semantics=("parallel",),
            vmem_limit_bytes=_VMEM_LIMIT),
    )(g, w3)
    return out.reshape(B, H, Wp8, Op)[:, :, :W, :o_real]


# ---------------------------------------------------------------------------
# Kernel 3: transition head = BN + ReLU + 2x2 average pool (runs BEFORE the 1x1
# conv, which is equivalent and 4x cheaper).  Adjacent column pairs are folded
# into the lane dim (free reshape), so the pooling is a pair of aligned lane
# slices plus one sublane-pair sum -- no strided ops.
# ---------------------------------------------------------------------------
def _bn_relu_pool_kernel(x_ref, sc_ref, sh_ref, o_ref):
    h = x_ref[0].astype(jnp.float32) * sc_ref[...] + sh_ref[...]   # (2, W2, 2C)
    h = jnp.maximum(h, 0.0)
    a = h[0] + h[1]                                                # sum over row pair
    C = o_ref.shape[-1]
    p = (a[:, :C] + a[:, C:]) * 0.25                               # sum over column pair
    o_ref[0, 0] = p.astype(o_ref.dtype)


@jax.jit
def bn_relu_avgpool2x2(x, sc2, sh2):
    """x: (B, H, W, C) -> 2x2 avg-pool of relu(x*sc + sh) -> (B, H/2, W/2, C) bf16.
    sc2/sh2 are the BN affines tiled twice along lanes (shape (1, 2C))."""
    B, H, W, C = x.shape
    assert H % 2 == 0 and W % 2 == 0
    H2, W2 = H // 2, W // 2
    xr = x.reshape(B, H, W2, 2 * C)                    # column pairs -> lanes (free)
    return pl.pallas_call(
        _bn_relu_pool_kernel,
        grid=(B, H2),
        in_specs=[
            pl.BlockSpec((1, 2, W2, 2 * C), lambda b, i: (b, i, 0, 0)),
            pl.BlockSpec((1, 2 * C), lambda b, i: (0, 0)),
            pl.BlockSpec((1, 2 * C), lambda b, i: (0, 0)),
        ],
        out_specs=pl.BlockSpec((1, 1, W2, C), lambda b, i: (b, i, 0, 0)),
        out_shape=jax.ShapeDtypeStruct((B, H2, W2, C), jnp.bfloat16),
        compiler_params=pltpu.CompilerParams(
            dimension_semantics=("parallel", "parallel"),
            vmem_limit_bytes=_VMEM_LIMIT),
    )(xr, sc2, sh2)


# ---------------------------------------------------------------------------
# Kernel 4: norm5 + ReLU + global average pool
# ---------------------------------------------------------------------------
def _bn_relu_gap_kernel(x_ref, sc_ref, sh_ref, o_ref):
    h = x_ref[0, :, :].astype(jnp.float32) * sc_ref[...] + sh_ref[...]
    h = jnp.maximum(h, 0.0)
    o_ref[...] = jnp.mean(h, axis=0, keepdims=True)


@jax.jit
def bn_relu_global_avg_pool(x, sc, sh):
    """x: (B, S, C) -> mean_S( relu(x*sc + sh) ) -> (B, C) f32."""
    B, S, C = x.shape
    return pl.pallas_call(
        _bn_relu_gap_kernel,
        grid=(B,),
        in_specs=[
            pl.BlockSpec((1, S, C), lambda b: (b, 0, 0)),
            pl.BlockSpec((1, C), lambda b: (0, 0)),
            pl.BlockSpec((1, C), lambda b: (0, 0)),
        ],
        out_specs=pl.BlockSpec((1, C), lambda b: (b, 0)),
        out_shape=jax.ShapeDtypeStruct((B, C), jnp.float32),
        compiler_params=pltpu.CompilerParams(
            dimension_semantics=("parallel",),
            vmem_limit_bytes=_VMEM_LIMIT),
    )(x, sc, sh)


# ---------------------------------------------------------------------------
# Plain-JAX glue (max-pool, stem im2col, dense concat)
# ---------------------------------------------------------------------------
def _maxpool_3x3_s2(x):
    # TODO(synk): 3x3/2 max-pool kept as plain-JAX lax.reduce_window glue.
    neg_inf = jnp.asarray(-jnp.inf, dtype=x.dtype)
    return lax.reduce_window(x, neg_inf, lax.max, (1, 3, 3, 1), (1, 2, 2, 1),
                             [(0, 0), (1, 1), (1, 1), (0, 0)])


def _append_features(x, c_real, new_feat):
    # DenseNet concat; channel dim kept zero-padded to a multiple of 128 so the
    # next 1x1 conv needs no separate activation-padding copy.
    # TODO(synk): in-place slab writeback (input_output_aliases / channel-offset
    # out_specs) not implemented; one concat copy per layer remains.
    c_new = c_real + new_feat.shape[-1]
    cp_new = _round_up(c_new, 128)
    parts = [x[..., :c_real], new_feat]
    if cp_new > c_new:
        parts.append(jnp.zeros(x.shape[:-1] + (cp_new - c_new,), x.dtype))
    return jnp.concatenate(parts, axis=-1), c_new


def _conv0_stem(x, p0):
    # 7x7/2 pad-3 stem conv with fused norm0+ReLU epilogue.  The 49-tap im2col for
    # this single layer stays in plain JAX (built in bf16); the matmul is Pallas.
    B, H, W, C = x.shape
    k, stride, pad = 7, 2, 3
    Ho = (H + 2 * pad - k) // stride + 1
    Wo = (W + 2 * pad - k) // stride + 1
    xp = jnp.pad(x.astype(jnp.bfloat16), ((0, 0), (pad, pad), (pad, pad), (0, 0)))
    cols = []
    for i in range(k):
        for j in range(k):
            cols.append(xp[:, i:i + stride * Ho:stride, j:j + stride * Wo:stride, :])
    patches = jnp.stack(cols, axis=-1)                  # (B,Ho,Wo,C,49); K = c*49+i*7+j
    patches = patches.reshape(B * Ho * Wo, C * k * k)
    Kp = p0["w"].shape[0]
    patches = jnp.pad(patches, ((0, 0), (0, Kp - C * k * k)))
    y = fused_matmul(patches, p0["w"], osc=p0["osc"], osh=p0["osh"],
                     post_affine=True, post_relu=True, out_dtype=jnp.bfloat16)
    return y.reshape(B, Ho, Wo, -1)                     # 128 channels (64 real)


# ---------------------------------------------------------------------------
# DenseNet-121 parameters: synthetic raw weights + one-time kernel-ready prep.
# ---------------------------------------------------------------------------
def make_densenet121_params(key):
    growth, bn_size = _GROWTH, 4
    block_config = (6, 12, 24, 16)
    keys = iter(jax.random.split(key, 1024))

    def nxt():
        return next(keys)

    def conv_w(o, i, k):
        fan_in = i * k * k
        return jax.random.normal(nxt(), (o, i, k, k), jnp.float32) * (2.0 / fan_in) ** 0.5

    def bn(c):
        gamma = 1.0 + 0.1 * jax.random.normal(nxt(), (c,), jnp.float32)
        beta = 0.1 * jax.random.normal(nxt(), (c,), jnp.float32)
        mean = 0.1 * jax.random.normal(nxt(), (c,), jnp.float32)
        var = jnp.ones((c,), jnp.float32)
        scale = gamma / jnp.sqrt(var + 1e-5)
        shift = beta - mean * scale
        return {"scale": scale, "shift": shift}

    params = {"conv0": conv_w(64, 3, 7), "norm0": bn(64),
              "blocks": [], "transitions": []}
    c = 64
    for bi, n_layers in enumerate(block_config):
        layers = []
        for _ in range(n_layers):
            layers.append({"norm1": bn(c),
                           "conv1": conv_w(bn_size * growth, c, 1),
                           "norm2": bn(bn_size * growth),
                           "conv2": conv_w(growth, bn_size * growth, 3)})
            c += growth
        params["blocks"].append(layers)
        if bi != len(block_config) - 1:
            params["transitions"].append({"norm": bn(c), "conv": conv_w(c // 2, c, 1)})
            c = c // 2
    params["norm5"] = bn(c)  # c == 1024
    params["classifier"] = {"w": 0.01 * jax.random.normal(nxt(), (c, 2), jnp.float32),
                            "b": jnp.zeros((2,), jnp.float32)}
    return params


def prepare_params(raw):
    """One-time pre-transpose / zero-pad / bf16-cast of every weight and folded BN
    affine into the kernel-ready layout (never rebuilt per forward call).
    Padded BN scale/shift entries are ZERO so padded channels stay exactly zero."""
    def vec(v, n):
        return jnp.zeros((1, n), jnp.float32).at[0, :v.shape[0]].set(v)

    def mat(w_kxo, kp, np_):
        k, o = w_kxo.shape
        return (jnp.zeros((kp, np_), jnp.float32).at[:k, :o].set(w_kxo)
                .astype(jnp.bfloat16))

    def conv_mat(w_oihw, kp, np_):
        o = w_oihw.shape[0]
        return mat(w_oihw.reshape(o, -1).T, kp, np_)    # K order = c*kh*kw + i*kw + j

    prep = {"conv0": {"w": conv_mat(raw["conv0"], _round_up(3 * 49, 128), 128),
                      "osc": vec(raw["norm0"]["scale"], 128),
                      "osh": vec(raw["norm0"]["shift"], 128)},
            "blocks": [], "transitions": []}
    c = 64
    for bi, layers in enumerate(raw["blocks"]):
        blk = []
        for lyr in layers:
            cp = _round_up(c, 128)
            cin2 = lyr["conv2"].shape[1]                # 128
            # 3x3 weights packed for the K=3*C kernel: w3[di, dj*C + c, o]
            w2 = jnp.transpose(lyr["conv2"], (2, 3, 1, 0)).reshape(3, 3 * cin2, _GROWTH)
            w2 = (jnp.zeros((3, 3 * cin2, 128), jnp.float32)
                  .at[:, :, :_GROWTH].set(w2).astype(jnp.bfloat16))
            blk.append({"isc1": vec(lyr["norm1"]["scale"], cp),
                        "ish1": vec(lyr["norm1"]["shift"], cp),
                        "w1": conv_mat(lyr["conv1"], cp, 128),
                        "osc2": vec(lyr["norm2"]["scale"], 128),
                        "osh2": vec(lyr["norm2"]["shift"], 128),
                        "w2": w2})
            c += _GROWTH
        prep["blocks"].append(blk)
        if bi != len(raw["blocks"]) - 1:
            t = raw["transitions"][bi]
            sc = vec(t["norm"]["scale"], c)             # c is a multiple of 128 here
            sh = vec(t["norm"]["shift"], c)
            prep["transitions"].append({"psc": jnp.tile(sc, (1, 2)),   # column-pair lanes
                                        "psh": jnp.tile(sh, (1, 2)),
                                        "w": conv_mat(t["conv"], c, c // 2)})
            c = c // 2
    prep["norm5"] = {"sc": vec(raw["norm5"]["scale"], c),
                     "sh": vec(raw["norm5"]["shift"], c)}
    prep["classifier"] = {"w": mat(raw["classifier"]["w"], c, 128),
                          "osc": jnp.ones((1, 128), jnp.float32),
                          "osh": vec(raw["classifier"]["b"], 128)}
    return prep


# ---------------------------------------------------------------------------
# Forward pass (mirrors torchvision densenet121 eval() + Linear(1024, 2))
# ---------------------------------------------------------------------------
def mass_detection_forward(params, data, accu_result=None):
    x = jnp.transpose(data["image"], (0, 2, 3, 1))      # NCHW -> NHWC
    x = _conv0_stem(x, params["conv0"])
    x = _maxpool_3x3_s2(x)
    c_real = 64
    n_blocks = len(params["blocks"])
    for bi, block in enumerate(params["blocks"]):
        for layer in block:
            B, H, W, Cp = x.shape
            # norm1+ReLU -> 1x1 conv -> norm2+ReLU, fused into one Pallas matmul
            # TODO(synk): fuse this matmul with the 3x3 conv so h never hits HBM.
            h = fused_matmul(x.reshape(B * H * W, Cp), layer["w1"],
                             layer["isc1"], layer["ish1"],
                             layer["osc2"], layer["osh2"],
                             pre=True, post_affine=True, post_relu=True,
                             out_dtype=jnp.bfloat16).reshape(B, H, W, -1)
            # 3x3 conv via the direct (roll + K=3C) Pallas kernel
            new_feat = conv3x3_direct(h, layer["w2"], o_real=_GROWTH)
            x, c_real = _append_features(x, c_real, new_feat)
        if bi != n_blocks - 1:
            t = params["transitions"][bi]
            # BN+ReLU+2x2 avg-pool FIRST (Pallas), then the 1x1 conv on the pooled
            # map (equivalent since the 1x1 conv is linear): 4x fewer MXU FLOPs.
            xp = bn_relu_avgpool2x2(x, t["psc"], t["psh"])
            B2, H2, W2, Cp2 = xp.shape
            x = fused_matmul(xp.reshape(B2 * H2 * W2, Cp2), t["w"],
                             out_dtype=jnp.bfloat16).reshape(B2, H2, W2, -1)
            c_real = x.shape[-1]

    B, H, W, Cp = x.shape                                # Cp == c_real == 1024
    pooled = bn_relu_global_avg_pool(x.reshape(B, H * W, Cp),
                                     params["norm5"]["sc"], params["norm5"]["sh"])
    logits = fused_matmul(pooled, params["classifier"]["w"],
                          osc=params["classifier"]["osc"],
                          osh=params["classifier"]["osh"],
                          post_affine=True, out_dtype=jnp.float32)
    return logits[:, :2]


if __name__ == "__main__":
    key = jax.random.PRNGKey(0)
    pkey, xkey = jax.random.split(key)
    raw_params = make_densenet121_params(pkey)
    params = prepare_params(raw_params)                  # one-time kernel-ready prep
    x = jax.random.normal(xkey, (2, 3, 32, 32), jnp.float32)
    data = {"image": x}
    fwd = jax.jit(mass_detection_forward)
    logits = jax.block_until_ready(fwd(params, data))
    assert logits.shape == (2, 2), logits.shape
    assert bool(jnp.all(jnp.isfinite(logits)))
    print("KERNEL_OK")
</pallas_src>

<mosaic_0001>
module attributes {stable_mosaic.version = 11 : i64} {
  func.func @_fused_matmul_kernel(%arg0: i32, %arg1: i32, %arg2: memref<512x256xbf16, #tpu.memory_space<vmem>>, %arg3: memref<1x256xf32, #tpu.memory_space<vmem>>, %arg4: memref<1x256xf32, #tpu.memory_space<vmem>>, %arg5: memref<256x128xbf16, #tpu.memory_space<vmem>>, %arg6: memref<1x128xf32, #tpu.memory_space<vmem>>, %arg7: memref<1x128xf32, #tpu.memory_space<vmem>>, %arg8: memref<512x128xbf16, #tpu.memory_space<vmem>>) attributes {dimension_semantics = [#tpu.dimension_semantics<parallel>, #tpu.dimension_semantics<parallel>], iteration_bounds = array<i64: 1, 1>, scalar_prefetch = 0 : i64, scratch_operands = 0 : i64, tpu.core_type = #tpu.core_type<tc>, window_params = [{transform_indices = @transform_0, window_bounds = array<i64: 512, 256>}, {pipeline_mode = #tpu.pipeline_mode<synchronous>, transform_indices = @transform_1, window_bounds = array<i64: 1, 256>}, {pipeline_mode = #tpu.pipeline_mode<synchronous>, transform_indices = @transform_2, window_bounds = array<i64: 1, 256>}, {transform_indices = @transform_3, window_bounds = array<i64: 256, 128>}, {transform_indices = @transform_4, window_bounds = array<i64: 1, 128>}, {transform_indices = @transform_5, window_bounds = array<i64: 1, 128>}, {transform_indices = @transform_6, window_bounds = array<i64: 512, 128>}]} {
    %c0 = arith.constant 0 : index
    %c0_0 = arith.constant 0 : index
    %0 = vector.load %arg2[%c0, %c0_0] : memref<512x256xbf16, #tpu.memory_space<vmem>>, vector<512x256xbf16>
    %c0_1 = arith.constant 0 : index
    %c0_2 = arith.constant 0 : index
    %1 = vector.load %arg5[%c0_1, %c0_2] : memref<256x128xbf16, #tpu.memory_space<vmem>>, vector<256x128xbf16>
    %cst = arith.constant dense<0.000000e+00> : vector<512x128xf32>
    %2 = tpu.matmul %0, %1, %cst {dimension_numbers = #tpu.dot_dimension_numbers<[1], [0], [0], [1], [0, 0, 1, 1], [], []>} : vector<512x256xbf16>, vector<256x128xbf16>, vector<512x128xf32> -> vector<512x128xf32>
    %c0_3 = arith.constant 0 : index
    %c0_4 = arith.constant 0 : index
    %3 = vector.load %arg6[%c0_3, %c0_4] : memref<1x128xf32, #tpu.memory_space<vmem>>, vector<1x128xf32>
    %4 = vector.broadcast %3 : vector<1x128xf32> to vector<512x128xf32>
    %5 = arith.mulf %2, %4 : vector<512x128xf32>
    %c0_5 = arith.constant 0 : index
    %c0_6 = arith.constant 0 : index
    %6 = vector.load %arg7[%c0_5, %c0_6] : memref<1x128xf32, #tpu.memory_space<vmem>>, vector<1x128xf32>
    %7 = vector.broadcast %6 : vector<1x128xf32> to vector<512x128xf32>
    %8 = arith.addf %5, %7 : vector<512x128xf32>
    %cst_7 = arith.constant 0.000000e+00 : f32
    %9 = vector.broadcast %cst_7 : f32 to vector<512x128xf32>
    %10 = arith.maximumf %8, %9 : vector<512x128xf32>
    %11 = arith.truncf %10 : vector<512x128xf32> to vector<512x128xbf16>
    %c0_8 = arith.constant 0 : index
    %c0_9 = arith.constant 0 : index
    %12 = vector.load %arg8[%c0_8, %c0_9] : memref<512x128xbf16, #tpu.memory_space<vmem>>, vector<512x128xbf16>
    tpu.vector_store %arg8[%c0_8, %c0_9], %11 {strides = array<i32>} : memref<512x128xbf16, #tpu.memory_space<vmem>>, vector<512x128xbf16>,
    return
  }
  func.func @transform_0(%arg0: i32, %arg1: i32) -> (i32, i32) {
    %c0_i32 = arith.constant 0 : i32
    %c0_i32_0 = arith.constant 0 : i32
    return %arg0, %c0_i32 : i32, i32
  }
  func.func @transform_1(%arg0: i32, %arg1: i32) -> (i32, i32) {
    %c0_i32 = arith.constant 0 : i32
    %c0_i32_0 = arith.constant 0 : i32
    %c0_i32_1 = arith.constant 0 : i32
    return %c0_i32, %c0_i32_0 : i32, i32
  }
  func.func @transform_2(%arg0: i32, %arg1: i32) -> (i32, i32) {
    %c0_i32 = arith.constant 0 : i32
    %c0_i32_0 = arith.constant 0 : i32
    %c0_i32_1 = arith.constant 0 : i32
    return %c0_i32, %c0_i32_0 : i32, i32
  }
  func.func @transform_3(%arg0: i32, %arg1: i32) -> (i32, i32) {
    %c0_i32 = arith.constant 0 : i32
    %c0_i32_0 = arith.constant 0 : i32
    return %c0_i32, %arg1 : i32, i32
  }
  func.func @transform_4(%arg0: i32, %arg1: i32) -> (i32, i32) {
    %c0_i32 = arith.constant 0 : i32
    %c0_i32_0 = arith.constant 0 : i32
    return %c0_i32, %arg1 : i32, i32
  }
  func.func @transform_5(%arg0: i32, %arg1: i32) -> (i32, i32) {
    %c0_i32 = arith.constant 0 : i32
    %c0_i32_0 = arith.constant 0 : i32
    return %c0_i32, %arg1 : i32, i32
  }
  func.func @transform_6(%arg0: i32, %arg1: i32) -> (i32, i32) {
    %c0_i32 = arith.constant 0 : i32
    return %arg0, %arg1 : i32, i32
  }
}

</mosaic_0001>

<bundles_post_ra>
// kernel: fused_matmul.1
= control target key start
LH: loop header
LB: loop body
LE: loop exit
PB: predicated region body
PF: predicated region fallthrough
CT: control target
= control target key end

     0   :  { %11 = vsyncpa [#allocation3], 0  ;;  %s2137_s0 = inlined_call_operand.hbm [shape: bf16[512,256], index: 0, kind: input, shape index: {}]   ;;  %s2138_s1 = inlined_call_operand.vmem [shape: f32[1,256], index: 1, kind: input, shape index: {}]   ;;  %s2139_s2 = inlined_call_operand.vmem [shape: f32[1,256], index: 2, kind: input, shape index: {}]   ;;  %s2140_s3 = inlined_call_operand.hbm [shape: bf16[256,128], index: 3, kind: input, shape index: {}]   ;;  %s2141_s4 = inlined_call_operand.vmem [shape: f32[1,128], index: 4, kind: input, shape index: {}]   ;;  %s2142_s5 = inlined_call_operand.vmem [shape: f32[1,128], index: 5, kind: input, shape index: {}]   ;;  %s2143_s6 = inlined_call_operand.hbm [shape: bf16[512,128], index: 6, kind: output, shape index: {}]  }
   0x1   :  { %12 = vsyncpa [#allocation6], 0 }
   0x2   :  { %13 = vsyncpa [#allocation4], 0  ;;  %s18_s22 = sshll.u32 %s2137_s0, 4  ;;  %s1950_s2 = smov [#allocation2]   ;;  %s19_s22 = int_to_ptr.hbm [resolvable:$true] %s18_s22 }
   0x3   :  { %s20_s23 = sshll.u32 %s1950_s2, 4  ;;  %s35_s26 = sshll.u32 %s2140_s3, 4  ;;  %s21_s23 = int_to_ptr.vmem [resolvable:$true] %s20_s23  ;;  %s36_s26 = int_to_ptr.hbm [resolvable:$true] %s35_s26 }
   0x4   :  { %s1951_s27 = smov 128   ;;  %s1952_s28 = smov 8  }
   0x5   :  { %26 = dma.hbm_to_vmem [thread:$0]  %s19_s22, 8192, %s21_s23, [#allocation3], %s1951_s27, %s1951_s27, %s1952_s28  }
   0x6   :  { %s1953_s29 = smov [#allocation5]   ;;  %s1954_s7 = smov 64  }
   0x7   :  { %s37_s30 = sshll.u32 %s1953_s29, 4  ;;  %s1955_s8 = smov 4   ;;  %s38_s30 = int_to_ptr.vmem [resolvable:$true] %s37_s30 }
   0x8   :  { %43 = dma.hbm_to_vmem [thread:$0]  %s36_s26, 2048, %s38_s30, [#allocation6], %s1954_s7, %s1954_s7, %s1955_s8  }
   0x9   :  { %1944 = dma.done.wait [#allocation3], 8192  }
   0xa   :  { %1945 = vsyncadd [#allocation3], 4294959104 }
   0xb   :  { %1946 = dma.done.wait [#allocation6], 2048  }
   0xc   :  { %1947 = vsyncadd [#allocation6], 4294965248  ;;  %v1645_v0 = vld [vmem:[#allocation5 + $0x38] sm:$0xff]  ;;  %v1644_v2 = vld [vmem:[#allocation5 + $0x30] sm:$0xff]  ;;  %s1240_s17 = sshll.u32 %s2143_s6, 4  ;;  %s1241_s17 = int_to_ptr.hbm [resolvable:$true] %s1240_s17 }
   0xd   :  { %v1653_v1 = vld [vmem:[#allocation5 + $0x78] sm:$0xff]  ;;  %568 = vmatpush.bf16.msra.mxu0 %v1645_v0  ;;  %1845 = vmatpush.bf16.msra.mxu2 %v1645_v0  ;;  %v1652_v3 = vld [vmem:[#allocation5 + $0x70] sm:$0xff]  ;;  %v1643_v4 = vld [vmem:[#allocation5 + $0x28] sm:$0xff] }
   0xe   :  { %737 = vmatpush.bf16.msra.mxu1 %v1653_v1  ;;  %1853 = vmatpush.bf16.msra.mxu3 %v1653_v1  ;;  %v1651_v5 = vld [vmem:[#allocation5 + $0x68] sm:$0xff]  ;;  %v1642_v6 = vld [vmem:[#allocation5 + $0x20] sm:$0xff]  ;;  %v1641_v8 = vld [vmem:[#allocation5 + $0x18] sm:$0xff] }
   0xf   :  { %v1650_v7 = vld [vmem:[#allocation5 + $0x60] sm:$0xff]  ;;  %v1649_v9 = vld [vmem:[#allocation5 + $0x58] sm:$0xff]  ;;  %v1640_v10 = vld [vmem:[#allocation5 + $0x10] sm:$0xff] }
  0x10   :  { %v1648_v11 = vld [vmem:[#allocation5 + $0x50] sm:$0xff]  ;;  %v1639_v12 = vld [vmem:[#allocation5 + $0x8] sm:$0xff]  ;;  %v1638_v14 = vld [vmem:[#allocation5] sm:$0xff] }
  0x11   :  { %569 = vmatpush.bf16.msra.mxu0 %v1644_v2  ;;  %1846 = vmatpush.bf16.msra.mxu2 %v1644_v2  ;;  %v1647_v13 = vld [vmem:[#allocation5 + $0x48] sm:$0xff]  ;;  %v1646_v15 = vld [vmem:[#allocation5 + $0x40] sm:$0xff]  ;;  %v1264_v28 = vld [vmem:[#allocation2 + $0x10] sm:$0xf] }
  0x12   :  { %738 = vmatpush.bf16.msra.mxu1 %v1652_v3  ;;  %1854 = vmatpush.bf16.msra.mxu3 %v1652_v3  ;;  %v1256_v16 = vld [vmem:[#allocation2] sm:$0xf]  ;;  %v1575_v17 = vld [vmem:[#allocation2 + $0x4] sm:$0xf0]  ;;  %v1574_v20 = vld [vmem:[#allocation2 + $0x4] sm:$0xf] }
  0x13   :  { %v1384_v18 = vld [vmem:[#allocation2 + $0x100] sm:$0xf]  ;;  %v1607_v19 = vld [vmem:[#allocation2 + $0x104] sm:$0xf0]  ;;  %v1258_v21 = vld [vmem:[#allocation2 + $0x8] sm:$0xf0]  ;;  %v1257_v24 = vor.u32 %v1575_v17, %v1256_v16 }
  0x14   :  { %v1606_v22 = vld [vmem:[#allocation2 + $0x104] sm:$0xf]  ;;  %v1386_v23 = vld [vmem:[#allocation2 + $0x108] sm:$0xf0]  ;;  %v1385_v25 = vor.u32 %v1607_v19, %v1384_v18  ;;  %v1261_v26 = vor.u32 %v1574_v20, %v1258_v21  ;;  %v1577_v29 = vld [vmem:[#allocation2 + $0x14] sm:$0xf0] }
  0x15   :  { %570 = vmatpush.bf16.msra.mxu0 %v1643_v4  ;;  %1847 = vmatpush.bf16.msra.mxu2 %v1643_v4  ;;  %v1389_v27 = vor.u32 %v1606_v22, %v1386_v23  ;;  %v1392_v30 = vld [vmem:[#allocation2 + $0x110] sm:$0xf]  ;;  %v1609_v31 = vld [vmem:[#allocation2 + $0x114] sm:$0xf0]  ;;  %v1576_v32 = vld [vmem:[#allocation2 + $0x14] sm:$0xf]  ;;  %v1265_v36 = vor.u32 %v1577_v29, %v1264_v28 }
  0x16   :  { %739 = vmatpush.bf16.msra.mxu1 %v1651_v5  ;;  %1855 = vmatpush.bf16.msra.mxu3 %v1651_v5  ;;  %v1266_v33 = vld [vmem:[#allocation2 + $0x18] sm:$0xf0]  ;;  %v1608_v34 = vld [vmem:[#allocation2 + $0x114] sm:$0xf]  ;;  %v1393_v37 = vor.u32 %v1609_v31, %v1392_v30  ;;  %v1272_v40 = vld [vmem:[#allocation2 + $0x20] sm:$0xf] }
  0x17   :  { %v1394_v35 = vld [vmem:[#allocation2 + $0x118] sm:$0xf0]  ;;  %v1269_v38 = vor.u32 %v1576_v32, %v1266_v33  ;;  %v1579_v41 = vld [vmem:[#allocation2 + $0x24] sm:$0xf0]  ;;  %v1400_v42 = vld [vmem:[#allocation2 + $0x120] sm:$0xf] }
  0x18   :  { %v1397_v39 = vor.u32 %v1608_v34, %v1394_v35  ;;  %v1611_v43 = vld [vmem:[#allocation2 + $0x124] sm:$0xf0]  ;;  %v1578_v44 = vld [vmem:[#allocation2 + $0x24] sm:$0xf]  ;;  %v1274_v45 = vld [vmem:[#allocation2 + $0x28] sm:$0xf0]  ;;  %v1273_v48 = vor.u32 %v1579_v41, %v1272_v40 }
  0x19   :  { %571 = vmatpush.bf16.msra.mxu0 %v1642_v6  ;;  %1848 = vmatpush.bf16.msra.mxu2 %v1642_v6  ;;  %v1610_v46 = vld [vmem:[#allocation2 + $0x124] sm:$0xf]  ;;  %v1402_v47 = vld [vmem:[#allocation2 + $0x128] sm:$0xf0]  ;;  %v1401_v49 = vor.u32 %v1611_v43, %v1400_v42  ;;  %v1277_v50 = vor.u32 %v1578_v44, %v1274_v45  ;;  %v1280_v52 = vld [vmem:[#allocation2 + $0x30] sm:$0xf] }
  0x1a   :  { %740 = vmatpush.bf16.msra.mxu1 %v1650_v7  ;;  %1856 = vmatpush.bf16.msra.mxu3 %v1650_v7  ;;  %v1405_v51 = vor.u32 %v1610_v46, %v1402_v47  ;;  %v1581_v53 = vld [vmem:[#allocation2 + $0x34] sm:$0xf0]  ;;  %v1408_v54 = vld [vmem:[#allocation2 + $0x130] sm:$0xf]  ;;  %v1580_v56 = vld [vmem:[#allocation2 + $0x34] sm:$0xf] }
  0x1b   :  { %v1613_v55 = vld [vmem:[#allocation2 + $0x134] sm:$0xf0]  ;;  %v1282_v57 = vld [vmem:[#allocation2 + $0x38] sm:$0xf0]  ;;  %v1612_v58 = vld [vmem:[#allocation2 + $0x134] sm:$0xf]  ;;  %v1281_v60 = vor.u32 %v1581_v53, %v1280_v52 }
  0x1c   :  { %v1410_v59 = vld [vmem:[#allocation2 + $0x138] sm:$0xf0]  ;;  %v1409_v61 = vor.u32 %v1613_v55, %v1408_v54  ;;  %v1285_v62 = vor.u32 %v1580_v56, %v1282_v57  ;;  %v1288_v0 = vld [vmem:[#allocation2 + $0x40] sm:$0xf]  ;;  %v1583_v1 = vld [vmem:[#allocation2 + $0x44] sm:$0xf0] }
  0x1d   :  { %572 = vmatpush.bf16.msra.mxu0 %v1641_v8  ;;  %1849 = vmatpush.bf16.msra.mxu2 %v1641_v8  ;;  %v1413_v63 = vor.u32 %v1612_v58, %v1410_v59  ;;  %v1416_v2 = vld [vmem:[#allocation2 + $0x140] sm:$0xf]  ;;  %v1615_v3 = vld [vmem:[#allocation2 + $0x144] sm:$0xf0]  ;;  %v1582_v4 = vld [vmem:[#allocation2 + $0x44] sm:$0xf]  ;;  %v1289_v8 = vor.u32 %v1583_v1, %v1288_v0 }
  0x1e   :  { %741 = vmatpush.bf16.msra.mxu1 %v1649_v9  ;;  %1857 = vmatpush.bf16.msra.mxu3 %v1649_v9  ;;  %v1290_v5 = vld [vmem:[#allocation2 + $0x48] sm:$0xf0]  ;;  %v1614_v6 = vld [vmem:[#allocation2 + $0x144] sm:$0xf]  ;;  %v1417_v9 = vor.u32 %v1615_v3, %v1416_v2  ;;  %v1584_v16 = vld [vmem:[#allocation2 + $0x54] sm:$0xf] }
  0x1f   :  { %v1418_v7 = vld [vmem:[#allocation2 + $0x148] sm:$0xf0]  ;;  %v1298_v17 = vld [vmem:[#allocation2 + $0x58] sm:$0xf0]  ;;  %v1616_v18 = vld [vmem:[#allocation2 + $0x154] sm:$0xf] }
  0x20   :  { %v1426_v19 = vld [vmem:[#allocation2 + $0x158] sm:$0xf0]  ;;  %v1301_v22 = vor.u32 %v1584_v16, %v1298_v17  ;;  %v1586_v28 = vld [vmem:[#allocation2 + $0x64] sm:$0xf]  ;;  %v1306_v29 = vld [vmem:[#allocation2 + $0x68] sm:$0xf0] }
  0x21   :  { %573 = vmatpush.bf16.msra.mxu0 %v1640_v10  ;;  %1850 = vmatpush.bf16.msra.mxu2 %v1640_v10  ;;  %v1293_v10 = vor.u32 %v1582_v4, %v1290_v5  ;;  %v1429_v23 = vor.u32 %v1616_v18, %v1426_v19  ;;  %v1618_v30 = vld [vmem:[#allocation2 + $0x164] sm:$0xf]  ;;  %v1434_v31 = vld [vmem:[#allocation2 + $0x168] sm:$0xf0]  ;;  %v1309_v34 = vor.u32 %v1586_v28, %v1306_v29  ;;  %v1588_v40 = vld [vmem:[#allocation2 + $0x74] sm:$0xf] }
  0x22   :  { %742 = vmatpush.bf16.msra.mxu1 %v1648_v11  ;;  %1858 = vmatpush.bf16.msra.mxu3 %v1648_v11  ;;  %v1421_v11 = vor.u32 %v1614_v6, %v1418_v7  ;;  %v1437_v35 = vor.u32 %v1618_v30, %v1434_v31  ;;  %v1314_v41 = vld [vmem:[#allocation2 + $0x78] sm:$0xf0]  ;;  %v1620_v42 = vld [vmem:[#allocation2 + $0x174] sm:$0xf]  ;;  %v1590_v52 = vld [vmem:[#allocation2 + $0x84] sm:$0xf] }
  0x23   :  { %v1442_v43 = vld [vmem:[#allocation2 + $0x178] sm:$0xf0]  ;;  %v1317_v46 = vor.u32 %v1588_v40, %v1314_v41  ;;  %v1322_v53 = vld [vmem:[#allocation2 + $0x88] sm:$0xf0]  ;;  %v1622_v54 = vld [vmem:[#allocation2 + $0x184] sm:$0xf] }
  0x24   :  { %v1445_v47 = vor.u32 %v1620_v42, %v1442_v43  ;;  %v1450_v55 = vld [vmem:[#allocation2 + $0x188] sm:$0xf0]  ;;  %v1325_v59 = vor.u32 %v1590_v52, %v1322_v53  ;;  %v2010_v3 = vld [vmem:[%s2142_s5] ss:$0 sm:$0xff]  ;;  %v1624_v16 = vld [vmem:[#allocation2 + $0x194] sm:$0xf] }
  0x25   :  { %574 = vmatpush.bf16.msra.mxu0 %v1639_v12  ;;  %1851 = vmatpush.bf16.msra.mxu2 %v1639_v12  ;;  %v1296_v12 = vld [vmem:[#allocation2 + $0x50] sm:$0xf]  ;;  %v1458_v17 = vld [vmem:[#allocation2 + $0x198] sm:$0xf0]  ;;  %v1594_v52 = vld [vmem:[#allocation2 + $0xa4] sm:$0xf] }
  0x26   :  { %743 = vmatpush.bf16.msra.mxu1 %v1647_v13  ;;  %1859 = vmatpush.bf16.msra.mxu3 %v1647_v13  ;;  %v1585_v13 = vld [vmem:[#allocation2 + $0x54] sm:$0xf0]  ;;  %v1461_v29 = vor.u32 %v1624_v16, %v1458_v17  ;;  %v1338_v53 = vld [vmem:[#allocation2 + $0xa8] sm:$0xf0] }
  0x27   :  { %v1297_v20 = vor.u32 %v1585_v13, %v1296_v12  ;;  %v1625_v13 = vld [vmem:[#allocation2 + $0x194] sm:$0xf0] }
  0x29   :  { %575 = vmatpush.bf16.msra.mxu0 %v1638_v14  ;;  %1852 = vmatpush.bf16.msra.mxu2 %v1638_v14  ;;  %v1424_v14 = vld [vmem:[#allocation2 + $0x150] sm:$0xf] }
  0x2a   :  { %744 = vmatpush.bf16.msra.mxu1 %v1646_v15  ;;  %1860 = vmatpush.bf16.msra.mxu3 %v1646_v15  ;;  %v1617_v15 = vld [vmem:[#allocation2 + $0x154] sm:$0xf0] }
  0x2b   :  { %v1425_v21 = vor.u32 %v1617_v15, %v1424_v14  ;;  %v1592_v14 = vld [vmem:[#allocation2 + $0x94] sm:$0xf]  ;;  %v1330_v15 = vld [vmem:[#allocation2 + $0x98] sm:$0xf0] }
  0x2c   :  { %576 = vmatmul.bf16.vlgmr.msra.gmra.mxu0 %v1257_v24  ;;  %656 = vmatmul.bf16.vlgmr.msra.gmra.mxu2 %v1385_v25  ;;  %v1304_v24 = vld [vmem:[#allocation2 + $0x60] sm:$0xf]  ;;  %v1587_v25 = vld [vmem:[#allocation2 + $0x64] sm:$0xf0] }
  0x2d   :  { %745 = vmatmul.bf16.vlgmr.msra.gmra.mxu1 %v1261_v26  ;;  %825 = vmatmul.bf16.vlgmr.msra.gmra.mxu3 %v1389_v27  ;;  %v1432_v26 = vld [vmem:[#allocation2 + $0x160] sm:$0xf]  ;;  %v1619_v27 = vld [vmem:[#allocation2 + $0x164] sm:$0xf0]  ;;  %v1305_v32 = vor.u32 %v1587_v25, %v1304_v24  ;;  %v1333_v24 = vor.u32 %v1592_v14, %v1330_v15 }
  0x2e   :  { %v1433_v33 = vor.u32 %v1619_v27, %v1432_v26 }
  0x3c   :  { %581 = vmatmul.bf16.gmra.mxu0 %v1265_v36  ;;  %661 = vmatmul.bf16.gmra.mxu2 %v1393_v37  ;;  %v1312_v36 = vld [vmem:[#allocation2 + $0x70] sm:$0xf]  ;;  %v1589_v37 = vld [vmem:[#allocation2 + $0x74] sm:$0xf0] }
  0x3d   :  { %750 = vmatmul.bf16.gmra.mxu1 %v1269_v38  ;;  %830 = vmatmul.bf16.gmra.mxu3 %v1397_v39  ;;  %v1440_v38 = vld [vmem:[#allocation2 + $0x170] sm:$0xf]  ;;  %v1621_v39 = vld [vmem:[#allocation2 + $0x174] sm:$0xf0]  ;;  %v1313_v44 = vor.u32 %v1589_v37, %v1312_v36 }
  0x3e   :  { %v1441_v45 = vor.u32 %v1621_v39, %v1440_v38 }
  0x4c   :  { %586 = vmatmul.bf16.gmra.mxu0 %v1273_v48  ;;  %666 = vmatmul.bf16.gmra.mxu2 %v1401_v49  ;;  %v1320_v48 = vld [vmem:[#allocation2 + $0x80] sm:$0xf]  ;;  %v1591_v49 = vld [vmem:[#allocation2 + $0x84] sm:$0xf0] }
  0x4d   :  { %755 = vmatmul.bf16.gmra.mxu1 %v1277_v50  ;;  %835 = vmatmul.bf16.gmra.mxu3 %v1405_v51  ;;  %v1448_v50 = vld [vmem:[#allocation2 + $0x180] sm:$0xf]  ;;  %v1623_v51 = vld [vmem:[#allocation2 + $0x184] sm:$0xf0]  ;;  %v1321_v56 = vor.u32 %v1591_v49, %v1320_v48 }
  0x4e   :  { %v1449_v57 = vor.u32 %v1623_v51, %v1448_v50  ;;  %v1464_v48 = vld [vmem:[#allocation2 + $0x1a0] sm:$0xf]  ;;  %v1627_v51 = vld [vmem:[#allocation2 + $0x1a4] sm:$0xf0] }
  0x5c   :  { %591 = vmatmul.bf16.gmra.mxu0 %v1281_v60  ;;  %671 = vmatmul.bf16.gmra.mxu2 %v1409_v61  ;;  %v1453_v60 = vor.u32 %v1622_v54, %v1450_v55  ;;  %v1626_v54 = vld [vmem:[#allocation2 + $0x1a4] sm:$0xf]  ;;  %v1466_v55 = vld [vmem:[#allocation2 + $0x1a8] sm:$0xf0] }
  0x5d   :  { %760 = vmatmul.bf16.gmra.mxu1 %v1285_v62  ;;  %840 = vmatmul.bf16.gmra.mxu3 %v1413_v63  ;;  %v2004_v63 = vld [vmem:[%s2141_s4] ss:$0 sm:$0xff] }
  0x6c   :  { %596 = vmatmul.bf16.gmra.mxu0 %v1289_v8  ;;  %676 = vmatmul.bf16.gmra.mxu2 %v1417_v9  ;;  %v1328_v8 = vld [vmem:[#allocation2 + $0x90] sm:$0xf]  ;;  %v1593_v9 = vld [vmem:[#allocation2 + $0x94] sm:$0xf0] }
  0x6d   :  { %765 = vmatmul.bf16.gmra.mxu1 %v1293_v10  ;;  %845 = vmatmul.bf16.gmra.mxu3 %v1421_v11  ;;  %v1456_v10 = vld [vmem:[#allocation2 + $0x190] sm:$0xf] }
  0x7c   :  { %601 = vmatmul.bf16.gmra.mxu0 %v1297_v20  ;;  %681 = vmatmul.bf16.gmra.mxu2 %v1425_v21 }
  0x7d   :  { %770 = vmatmul.bf16.gmra.mxu1 %v1301_v22  ;;  %850 = vmatmul.bf16.gmra.mxu3 %v1429_v23  ;;  %v1329_v22 = vor.u32 %v1593_v9, %v1328_v8  ;;  %v1457_v23 = vor.u32 %v1625_v13, %v1456_v10 }
  0x8c   :  { %606 = vmatmul.bf16.gmra.mxu0 %v1305_v32  ;;  %686 = vmatmul.bf16.gmra.mxu2 %v1433_v33 }
  0x8d   :  { %775 = vmatmul.bf16.gmra.mxu1 %v1309_v34  ;;  %855 = vmatmul.bf16.gmra.mxu3 %v1437_v35 }
  0x9c   :  { %611 = vmatmul.bf16.gmra.mxu0 %v1313_v44  ;;  %691 = vmatmul.bf16.gmra.mxu2 %v1441_v45 }
  0x9d   :  { %780 = vmatmul.bf16.gmra.mxu1 %v1317_v46  ;;  %860 = vmatmul.bf16.gmra.mxu3 %v1445_v47  ;;  %v1336_v46 = vld [vmem:[#allocation2 + $0xa0] sm:$0xf]  ;;  %v1595_v47 = vld [vmem:[#allocation2 + $0xa4] sm:$0xf0] }
  0xa9   :  { %v577_v58 = vpop.f32.mrf.mxu0 }
  0xaa   :  { %v746_v61 = vpop.f32.mrf.mxu1 }
  0xab   :  { %v747_v62 = vadd.f32 %v746_v61, %v577_v58  ;;  %v1465_v61 = vor.u32 %v1627_v51, %v1464_v48 }
  0xac   :  { %616 = vmatmul.bf16.gmra.mxu0 %v1321_v56  ;;  %696 = vmatmul.bf16.gmra.mxu2 %v1449_v57 }
  0xad   :  { %785 = vmatmul.bf16.gmra.mxu1 %v1325_v59  ;;  %865 = vmatmul.bf16.gmra.mxu3 %v1453_v60  ;;  %v910_v2 = vmul.f32 %v2004_v63, %v747_v62  ;;  %v1337_v60 = vor.u32 %v1595_v47, %v1336_v46  ;;  %v1341_v62 = vor.u32 %v1594_v52, %v1338_v53 }
  0xaf   :  { %v657_v0 = vpop.f32.mrf.mxu2  ;;  %v978_v11 = vadd.f32 %v2010_v3, %v910_v2 }
  0xb0   :  { %v826_v1 = vpop.f32.mrf.mxu3 }
  0xb1   :  { %v579_v4 = vpop.f32.mrf.mxu0  ;;  %v827_v6 = vadd.f32 %v826_v1, %v657_v0  ;;  %v1042_v25 = vmax.f32 %v978_v11, 0.0 }
  0xb2   :  { %v748_v5 = vpop.f32.mrf.mxu1 }
  0xb3   :  { %v749_v7 = vadd.f32 %v748_v5, %v579_v4  ;;  %v942_v18 = vmul.f32 %v2004_v63, %v827_v6  ;;  %v1469_v5 = vor.u32 %v1626_v54, %v1466_v55 }
  0xb5   :  { %v911_v12 = vmul.f32 %v2004_v63, %v749_v7  ;;  %v1010_v31 = vadd.f32 %v2010_v3, %v942_v18 }
  0xb7   :  { %v979_v19 = vadd.f32 %v2010_v3, %v911_v12  ;;  %v659_v20 = vpop.f32.mrf.mxu2  ;;  %v1074_v36 = vmax.f32 %v1010_v31, 0.0  ;;  %v1474_v31 = vld [vmem:[#allocation2 + $0x1b8] sm:$0xf0] }
  0xb8   :  { %v828_v21 = vpop.f32.mrf.mxu3 }
  0xb9   :  { %v1043_v26 = vmax.f32 %v979_v19, 0.0  ;;  %v829_v27 = vadd.f32 %v828_v21, %v659_v20  ;;  %v582_v28 = vpop.f32.mrf.mxu0 }
  0xba   :  { %v751_v30 = vpop.f32.mrf.mxu1 }
  0xbb   :  { %v1657_v32 = vpack.c.bf16 %v1043_v26, %v1042_v25  ;;  %v943_v33 = vmul.f32 %v2004_v63, %v829_v27  ;;  %v752_v35 = vadd.f32 %v751_v30, %v582_v28  ;;  %v1629_v27 = vld [vmem:[#allocation2 + $0x1b4] sm:$0xf0]  ;;  %v1596_v28 = vld [vmem:[#allocation2 + $0xb4] sm:$0xf] }
  0xbc   :  { %621 = vmatmul.bf16.gmra.mxu0 %v1329_v22  ;;  %701 = vmatmul.bf16.gmra.mxu2 %v1457_v23  ;;  %v1344_v22 = vld [vmem:[#allocation2 + $0xb0] sm:$0xf]  ;;  %v1597_v23 = vld [vmem:[#allocation2 + $0xb4] sm:$0xf0]  ;;  %v1628_v30 = vld [vmem:[#allocation2 + $0x1b4] sm:$0xf] }
  0xbd   :  { %1658 = vst [vmem:[#allocation7] sm:$0xff] %v1657_v32   ;;  %v1011_v34 = vadd.f32 %v2010_v3, %v943_v33  ;;  %790 = vmatmul.bf16.gmra.mxu1 %v1333_v24  ;;  %870 = vmatmul.bf16.gmra.mxu3 %v1461_v29  ;;  %v912_v41 = vmul.f32 %v2004_v63, %v752_v35  ;;  %v1472_v24 = vld [vmem:[#allocation2 + $0x1b0] sm:$0xf]  ;;  %v1346_v29 = vld [vmem:[#allocation2 + $0xb8] sm:$0xf0] }
  0xbf   :  { %v1075_v37 = vmax.f32 %v1011_v34, 0.0  ;;  %v662_v38 = vpop.f32.mrf.mxu2  ;;  %v980_v49 = vadd.f32 %v2010_v3, %v912_v41 }
  0xc0   :  { %v831_v39 = vpop.f32.mrf.mxu3 }
  0xc1   :  { %v1737_v40 = vpack.c.bf16 %v1075_v37, %v1074_v36  ;;  %v584_v42 = vpop.f32.mrf.mxu0  ;;  %v832_v44 = vadd.f32 %v831_v39, %v662_v38  ;;  %v1044_v0 = vmax.f32 %v980_v49, 0.0  ;;  %v1345_v36 = vor.u32 %v1597_v23, %v1344_v22 }
  0xc2   :  { %v753_v43 = vpop.f32.mrf.mxu1  ;;  %v1473_v37 = vor.u32 %v1629_v27, %v1472_v24  ;;  %v1349_v38 = vor.u32 %v1596_v28, %v1346_v29 }
  0xc3   :  { %1829 = vst [vmem:[#allocation7 + $0x80] sm:$0xff] %v1737_v40   ;;  %v754_v45 = vadd.f32 %v753_v43, %v584_v42  ;;  %v944_v56 = vmul.f32 %v2004_v63, %v832_v44  ;;  %v1477_v43 = vor.u32 %v1628_v30, %v1474_v31 }
  0xc5   :  { %v913_v50 = vmul.f32 %v2004_v63, %v754_v45  ;;  %v1012_v7 = vadd.f32 %v2010_v3, %v944_v56 }
  0xc7   :  { %v981_v57 = vadd.f32 %v2010_v3, %v913_v50  ;;  %v664_v58 = vpop.f32.mrf.mxu2  ;;  %v1076_v12 = vmax.f32 %v1012_v7, 0.0  ;;  %v1482_v7 = vld [vmem:[#allocation2 + $0x1c8] sm:$0xf0] }
  0xc8   :  { %v833_v59 = vpop.f32.mrf.mxu3 }
  0xc9   :  { %v1045_v1 = vmax.f32 %v981_v57, 0.0  ;;  %v834_v2 = vadd.f32 %v833_v59, %v664_v58  ;;  %v587_v4 = vpop.f32.mrf.mxu0 }
  0xca   :  { %v756_v6 = vpop.f32.mrf.mxu1 }
  0xcb   :  { %v1662_v8 = vpack.c.bf16 %v1045_v1, %v1044_v0  ;;  %v945_v9 = vmul.f32 %v2004_v63, %v834_v2  ;;  %v757_v11 = vadd.f32 %v756_v6, %v587_v4  ;;  %v1631_v2 = vld [vmem:[#allocation2 + $0x1c4] sm:$0xf0]  ;;  %v1598_v4 = vld [vmem:[#allocation2 + $0xc4] sm:$0xf] }
  0xcc   :  { %626 = vmatmul.bf16.gmra.mxu0 %v1337_v60  ;;  %706 = vmatmul.bf16.gmra.mxu2 %v1465_v61  ;;  %v1352_v60 = vld [vmem:[#allocation2 + $0xc0] sm:$0xf]  ;;  %v1599_v61 = vld [vmem:[#allocation2 + $0xc4] sm:$0xf0]  ;;  %v1630_v6 = vld [vmem:[#allocation2 + $0x1c4] sm:$0xf] }
  0xcd   :  { %1814 = vst [vmem:[#allocation7 + $0x8] sm:$0xff] %v1662_v8   ;;  %v1013_v10 = vadd.f32 %v2010_v3, %v945_v9  ;;  %795 = vmatmul.bf16.gmra.mxu1 %v1341_v62  ;;  %875 = vmatmul.bf16.gmra.mxu3 %v1469_v5  ;;  %v914_v17 = vmul.f32 %v2004_v63, %v757_v11  ;;  %v1480_v62 = vld [vmem:[#allocation2 + $0x1c0] sm:$0xf]  ;;  %v1354_v5 = vld [vmem:[#allocation2 + $0xc8] sm:$0xf0] }
  0xcf   :  { %v1077_v13 = vmax.f32 %v1013_v10, 0.0  ;;  %v667_v14 = vpop.f32.mrf.mxu2  ;;  %v982_v25 = vadd.f32 %v2010_v3, %v914_v17 }
  0xd0   :  { %v836_v15 = vpop.f32.mrf.mxu3 }
  0xd1   :  { %v1742_v16 = vpack.c.bf16 %v1077_v13, %v1076_v12  ;;  %v589_v18 = vpop.f32.mrf.mxu0  ;;  %v837_v20 = vadd.f32 %v836_v15, %v667_v14  ;;  %v1046_v39 = vmax.f32 %v982_v25, 0.0  ;;  %v1353_v12 = vor.u32 %v1599_v61, %v1352_v60 }
  0xd2   :  { %v758_v19 = vpop.f32.mrf.mxu1  ;;  %v1481_v13 = vor.u32 %v1631_v2, %v1480_v62  ;;  %v1357_v14 = vor.u32 %v1598_v4, %v1354_v5 }
  0xd3   :  { %1830 = vst [vmem:[#allocation7 + $0x88] sm:$0xff] %v1742_v16   ;;  %v759_v21 = vadd.f32 %v758_v19, %v589_v18  ;;  %v946_v32 = vmul.f32 %v2004_v63, %v837_v20  ;;  %v1485_v19 = vor.u32 %v1630_v6, %v1482_v7 }
  0xd5   :  { %v915_v26 = vmul.f32 %v2004_v63, %v759_v21  ;;  %v1014_v45 = vadd.f32 %v2010_v3, %v946_v32 }
  0xd7   :  { %v983_v33 = vadd.f32 %v2010_v3, %v915_v26  ;;  %v669_v34 = vpop.f32.mrf.mxu2  ;;  %v1078_v50 = vmax.f32 %v1014_v45, 0.0  ;;  %v1490_v45 = vld [vmem:[#allocation2 + $0x1d8] sm:$0xf0] }
  0xd8   :  { %v838_v35 = vpop.f32.mrf.mxu3 }
  0xd9   :  { %v1047_v40 = vmax.f32 %v983_v33, 0.0  ;;  %v839_v41 = vadd.f32 %v838_v35, %v669_v34  ;;  %v592_v42 = vpop.f32.mrf.mxu0 }
  0xda   :  { %v761_v44 = vpop.f32.mrf.mxu1 }
  0xdb   :  { %v1667_v46 = vpack.c.bf16 %v1047_v40, %v1046_v39  ;;  %v947_v47 = vmul.f32 %v2004_v63, %v839_v41  ;;  %v762_v49 = vadd.f32 %v761_v44, %v592_v42  ;;  %v1633_v41 = vld [vmem:[#allocation2 + $0x1d4] sm:$0xf0]  ;;  %v1600_v42 = vld [vmem:[#allocation2 + $0xd4] sm:$0xf] }
  0xdc   :  { %631 = vmatmul.bf16.gmra.mxu0 %v1345_v36  ;;  %711 = vmatmul.bf16.gmra.mxu2 %v1473_v37  ;;  %v1360_v36 = vld [vmem:[#allocation2 + $0xd0] sm:$0xf]  ;;  %v1601_v37 = vld [vmem:[#allocation2 + $0xd4] sm:$0xf0]  ;;  %v1632_v44 = vld [vmem:[#allocation2 + $0x1d4] sm:$0xf] }
  0xdd   :  { %1815 = vst [vmem:[#allocation7 + $0x10] sm:$0xff] %v1667_v46   ;;  %v1015_v48 = vadd.f32 %v2010_v3, %v947_v47  ;;  %800 = vmatmul.bf16.gmra.mxu1 %v1349_v38  ;;  %880 = vmatmul.bf16.gmra.mxu3 %v1477_v43  ;;  %v916_v55 = vmul.f32 %v2004_v63, %v762_v49  ;;  %v1488_v38 = vld [vmem:[#allocation2 + $0x1d0] sm:$0xf]  ;;  %v1362_v43 = vld [vmem:[#allocation2 + $0xd8] sm:$0xf0] }
  0xdf   :  { %v1079_v51 = vmax.f32 %v1015_v48, 0.0  ;;  %v672_v52 = vpop.f32.mrf.mxu2  ;;  %v984_v0 = vadd.f32 %v2010_v3, %v916_v55 }
  0xe0   :  { %v841_v53 = vpop.f32.mrf.mxu3 }
  0xe1   :  { %v1747_v54 = vpack.c.bf16 %v1079_v51, %v1078_v50  ;;  %v594_v56 = vpop.f32.mrf.mxu0  ;;  %v842_v58 = vadd.f32 %v841_v53, %v672_v52  ;;  %v1048_v15 = vmax.f32 %v984_v0, 0.0  ;;  %v1361_v50 = vor.u32 %v1601_v37, %v1360_v36 }
  0xe2   :  { %v763_v57 = vpop.f32.mrf.mxu1  ;;  %v1489_v51 = vor.u32 %v1633_v41, %v1488_v38  ;;  %v1365_v52 = vor.u32 %v1600_v42, %v1362_v43 }
  0xe3   :  { %1831 = vst [vmem:[#allocation7 + $0x90] sm:$0xff] %v1747_v54   ;;  %v764_v59 = vadd.f32 %v763_v57, %v594_v56  ;;  %v948_v8 = vmul.f32 %v2004_v63, %v842_v58  ;;  %v1493_v57 = vor.u32 %v1632_v44, %v1490_v45 }
  0xe5   :  { %v917_v1 = vmul.f32 %v2004_v63, %v764_v59  ;;  %v1016_v21 = vadd.f32 %v2010_v3, %v948_v8 }
  0xe7   :  { %v985_v9 = vadd.f32 %v2010_v3, %v917_v1  ;;  %v674_v10 = vpop.f32.mrf.mxu2  ;;  %v1080_v26 = vmax.f32 %v1016_v21, 0.0  ;;  %v1498_v21 = vld [vmem:[#allocation2 + $0x1e8] sm:$0xf0] }
  0xe8   :  { %v843_v11 = vpop.f32.mrf.mxu3 }
  0xe9   :  { %v1049_v16 = vmax.f32 %v985_v9, 0.0  ;;  %v844_v17 = vadd.f32 %v843_v11, %v674_v10  ;;  %v597_v18 = vpop.f32.mrf.mxu0 }
  0xea   :  { %v766_v20 = vpop.f32.mrf.mxu1 }
  0xeb   :  { %v1672_v22 = vpack.c.bf16 %v1049_v16, %v1048_v15  ;;  %v949_v23 = vmul.f32 %v2004_v63, %v844_v17  ;;  %v767_v25 = vadd.f32 %v766_v20, %v597_v18  ;;  %v1635_v17 = vld [vmem:[#allocation2 + $0x1e4] sm:$0xf0]  ;;  %v1602_v18 = vld [vmem:[#allocation2 + $0xe4] sm:$0xf] }
  0xec   :  { %636 = vmatmul.bf16.gmra.mxu0 %v1353_v12  ;;  %716 = vmatmul.bf16.gmra.mxu2 %v1481_v13  ;;  %v1368_v12 = vld [vmem:[#allocation2 + $0xe0] sm:$0xf]  ;;  %v1603_v13 = vld [vmem:[#allocation2 + $0xe4] sm:$0xf0]  ;;  %v1634_v20 = vld [vmem:[#allocation2 + $0x1e4] sm:$0xf] }
  0xed   :  { %1816 = vst [vmem:[#allocation7 + $0x18] sm:$0xff] %v1672_v22   ;;  %v1017_v24 = vadd.f32 %v2010_v3, %v949_v23  ;;  %805 = vmatmul.bf16.gmra.mxu1 %v1357_v14  ;;  %885 = vmatmul.bf16.gmra.mxu3 %v1485_v19  ;;  %v918_v31 = vmul.f32 %v2004_v63, %v767_v25  ;;  %v1496_v14 = vld [vmem:[#allocation2 + $0x1e0] sm:$0xf]  ;;  %v1370_v19 = vld [vmem:[#allocation2 + $0xe8] sm:$0xf0] }
  0xef   :  { %v1081_v27 = vmax.f32 %v1017_v24, 0.0  ;;  %v677_v28 = vpop.f32.mrf.mxu2  ;;  %v986_v39 = vadd.f32 %v2010_v3, %v918_v31 }
  0xf0   :  { %v846_v29 = vpop.f32.mrf.mxu3 }
  0xf1   :  { %v1752_v30 = vpack.c.bf16 %v1081_v27, %v1080_v26  ;;  %v599_v32 = vpop.f32.mrf.mxu0  ;;  %v847_v34 = vadd.f32 %v846_v29, %v677_v28  ;;  %v1050_v53 = vmax.f32 %v986_v39, 0.0  ;;  %v1369_v26 = vor.u32 %v1603_v13, %v1368_v12 }
  0xf2   :  { %v768_v33 = vpop.f32.mrf.mxu1  ;;  %v1497_v27 = vor.u32 %v1635_v17, %v1496_v14  ;;  %v1373_v28 = vor.u32 %v1602_v18, %v1370_v19 }
  0xf3   :  { %1832 = vst [vmem:[#allocation7 + $0x98] sm:$0xff] %v1752_v30   ;;  %v769_v35 = vadd.f32 %v768_v33, %v599_v32  ;;  %v950_v46 = vmul.f32 %v2004_v63, %v847_v34  ;;  %v1501_v33 = vor.u32 %v1634_v20, %v1498_v21 }
  0xf5   :  { %v919_v40 = vmul.f32 %v2004_v63, %v769_v35  ;;  %v1018_v59 = vadd.f32 %v2010_v3, %v950_v46 }
  0xf7   :  { %v987_v47 = vadd.f32 %v2010_v3, %v919_v40  ;;  %v679_v48 = vpop.f32.mrf.mxu2  ;;  %v1082_v1 = vmax.f32 %v1018_v59, 0.0  ;;  %v1506_v59 = vld [vmem:[#allocation2 + $0x1f8] sm:$0xf0] }
  0xf8   :  { %v848_v49 = vpop.f32.mrf.mxu3 }
  0xf9   :  { %v1051_v54 = vmax.f32 %v987_v47, 0.0  ;;  %v849_v55 = vadd.f32 %v848_v49, %v679_v48  ;;  %v602_v56 = vpop.f32.mrf.mxu0 }
  0xfa   :  { %v771_v58 = vpop.f32.mrf.mxu1 }
  0xfb   :  { %v1677_v60 = vpack.c.bf16 %v1051_v54, %v1050_v53  ;;  %v951_v61 = vmul.f32 %v2004_v63, %v849_v55  ;;  %v772_v0 = vadd.f32 %v771_v58, %v602_v56  ;;  %v1637_v55 = vld [vmem:[#allocation2 + $0x1f4] sm:$0xf0]  ;;  %v1604_v56 = vld [vmem:[#allocation2 + $0xf4] sm:$0xf] }
  0xfc   :  { %641 = vmatmul.bf16.gmra.mxu0 %v1361_v50  ;;  %721 = vmatmul.bf16.gmra.mxu2 %v1489_v51  ;;  %v1376_v50 = vld [vmem:[#allocation2 + $0xf0] sm:$0xf]  ;;  %v1605_v51 = vld [vmem:[#allocation2 + $0xf4] sm:$0xf0]  ;;  %v1636_v58 = vld [vmem:[#allocation2 + $0x1f4] sm:$0xf] }
  0xfd   :  { %1817 = vst [vmem:[#allocation7 + $0x20] sm:$0xff] %v1677_v60   ;;  %v1019_v62 = vadd.f32 %v2010_v3, %v951_v61  ;;  %810 = vmatmul.bf16.gmra.mxu1 %v1365_v52  ;;  %890 = vmatmul.bf16.gmra.mxu3 %v1493_v57  ;;  %v920_v7 = vmul.f32 %v2004_v63, %v772_v0  ;;  %v1504_v52 = vld [vmem:[#allocation2 + $0x1f0] sm:$0xf]  ;;  %v1378_v57 = vld [vmem:[#allocation2 + $0xf8] sm:$0xf0] }
  0xff   :  { %v1083_v2 = vmax.f32 %v1019_v62, 0.0  ;;  %v682_v4 = vpop.f32.mrf.mxu2  ;;  %v988_v15 = vadd.f32 %v2010_v3, %v920_v7 }
 0x100   :  { %v851_v5 = vpop.f32.mrf.mxu3 }
 0x101   :  { %v1757_v6 = vpack.c.bf16 %v1083_v2, %v1082_v1  ;;  %v604_v8 = vpop.f32.mrf.mxu0  ;;  %v852_v10 = vadd.f32 %v851_v5, %v682_v4  ;;  %v1052_v29 = vmax.f32 %v988_v15, 0.0  ;;  %v1377_v1 = vor.u32 %v1605_v51, %v1376_v50 }
 0x102   :  { %v773_v9 = vpop.f32.mrf.mxu1  ;;  %v1505_v2 = vor.u32 %v1637_v55, %v1504_v52  ;;  %v1381_v4 = vor.u32 %v1604_v56, %v1378_v57 }
 0x103   :  { %1833 = vst [vmem:[#allocation7 + $0xa0] sm:$0xff] %v1757_v6   ;;  %v774_v11 = vadd.f32 %v773_v9, %v604_v8  ;;  %v952_v22 = vmul.f32 %v2004_v63, %v852_v10  ;;  %v1509_v9 = vor.u32 %v1636_v58, %v1506_v59 }
 0x105   :  { %v921_v16 = vmul.f32 %v2004_v63, %v774_v11  ;;  %v1020_v35 = vadd.f32 %v2010_v3, %v952_v22 }
 0x107   :  { %v989_v23 = vadd.f32 %v2010_v3, %v921_v16  ;;  %v684_v24 = vpop.f32.mrf.mxu2  ;;  %v1084_v40 = vmax.f32 %v1020_v35, 0.0 }
 0x108   :  { %v853_v25 = vpop.f32.mrf.mxu3 }
 0x109   :  { %v1053_v30 = vmax.f32 %v989_v23, 0.0  ;;  %v854_v31 = vadd.f32 %v853_v25, %v684_v24  ;;  %v607_v32 = vpop.f32.mrf.mxu0 }
 0x10a   :  { %v776_v34 = vpop.f32.mrf.mxu1 }
 0x10b   :  { %v1682_v36 = vpack.c.bf16 %v1053_v30, %v1052_v29  ;;  %v953_v37 = vmul.f32 %v2004_v63, %v854_v31  ;;  %v777_v39 = vadd.f32 %v776_v34, %v607_v32 }
 0x10c   :  { %646 = vmatmul.bf16.gmra.mxu0 %v1369_v26  ;;  %726 = vmatmul.bf16.gmra.mxu2 %v1497_v27 }
 0x10d   :  { %1818 = vst [vmem:[#allocation7 + $0x28] sm:$0xff] %v1682_v36   ;;  %v1021_v38 = vadd.f32 %v2010_v3, %v953_v37  ;;  %815 = vmatmul.bf16.gmra.mxu1 %v1373_v28  ;;  %895 = vmatmul.bf16.gmra.mxu3 %v1501_v33  ;;  %v922_v45 = vmul.f32 %v2004_v63, %v777_v39 }
 0x10f   :  { %v1085_v41 = vmax.f32 %v1021_v38, 0.0  ;;  %v687_v42 = vpop.f32.mrf.mxu2  ;;  %v990_v53 = vadd.f32 %v2010_v3, %v922_v45 }
 0x110   :  { %v856_v43 = vpop.f32.mrf.mxu3 }
 0x111   :  { %v1762_v44 = vpack.c.bf16 %v1085_v41, %v1084_v40  ;;  %v609_v46 = vpop.f32.mrf.mxu0  ;;  %v857_v48 = vadd.f32 %v856_v43, %v687_v42  ;;  %v1054_v5 = vmax.f32 %v990_v53, 0.0 }
 0x112   :  { %v778_v47 = vpop.f32.mrf.mxu1 }
 0x113   :  { %1834 = vst [vmem:[#allocation7 + $0xa8] sm:$0xff] %v1762_v44   ;;  %v779_v49 = vadd.f32 %v778_v47, %v609_v46  ;;  %v954_v60 = vmul.f32 %v2004_v63, %v857_v48 }
 0x115   :  { %v923_v54 = vmul.f32 %v2004_v63, %v779_v49  ;;  %v1022_v11 = vadd.f32 %v2010_v3, %v954_v60 }
 0x117   :  { %v991_v61 = vadd.f32 %v2010_v3, %v923_v54  ;;  %v689_v62 = vpop.f32.mrf.mxu2  ;;  %v1086_v16 = vmax.f32 %v1022_v11, 0.0 }
 0x118   :  { %v858_v0 = vpop.f32.mrf.mxu3 }
 0x119   :  { %v1055_v6 = vmax.f32 %v991_v61, 0.0  ;;  %v859_v7 = vadd.f32 %v858_v0, %v689_v62  ;;  %v612_v8 = vpop.f32.mrf.mxu0 }
 0x11a   :  { %v781_v10 = vpop.f32.mrf.mxu1 }
 0x11b   :  { %v1687_v12 = vpack.c.bf16 %v1055_v6, %v1054_v5  ;;  %v955_v13 = vmul.f32 %v2004_v63, %v859_v7  ;;  %v782_v15 = vadd.f32 %v781_v10, %v612_v8 }
 0x11c   :  { %651 = vmatmul.bf16.gmra.mxu0 %v1377_v1  ;;  %731 = vmatmul.bf16.gmra.mxu2 %v1505_v2 }
 0x11d   :  { %1819 = vst [vmem:[#allocation7 + $0x30] sm:$0xff] %v1687_v12   ;;  %v1023_v14 = vadd.f32 %v2010_v3, %v955_v13  ;;  %820 = vmatmul.bf16.gmra.mxu1 %v1381_v4  ;;  %900 = vmatmul.bf16.gmra.mxu3 %v1509_v9  ;;  %v924_v21 = vmul.f32 %v2004_v63, %v782_v15 }
 0x11f   :  { %v1087_v17 = vmax.f32 %v1023_v14, 0.0  ;;  %v692_v18 = vpop.f32.mrf.mxu2  ;;  %v992_v26 = vadd.f32 %v2010_v3, %v924_v21 }
 0x120   :  { %v861_v19 = vpop.f32.mrf.mxu3 }
 0x121   :  { %v1767_v20 = vpack.c.bf16 %v1087_v17, %v1086_v16  ;;  %v614_v22 = vpop.f32.mrf.mxu0  ;;  %v862_v24 = vadd.f32 %v861_v19, %v692_v18  ;;  %v1056_v32 = vmax.f32 %v992_v26, 0.0 }
 0x122   :  { %v783_v23 = vpop.f32.mrf.mxu1 }
 0x123   :  { %1835 = vst [vmem:[#allocation7 + $0xb0] sm:$0xff] %v1767_v20   ;;  %v784_v25 = vadd.f32 %v783_v23, %v614_v22  ;;  %v956_v28 = vmul.f32 %v2004_v63, %v862_v24 }
 0x125   :  { %v925_v27 = vmul.f32 %v2004_v63, %v784_v25  ;;  %v1024_v37 = vadd.f32 %v2010_v3, %v956_v28 }
 0x127   :  { %v993_v29 = vadd.f32 %v2010_v3, %v925_v27  ;;  %v694_v30 = vpop.f32.mrf.mxu2  ;;  %v1088_v42 = vmax.f32 %v1024_v37, 0.0 }
 0x128   :  { %v863_v31 = vpop.f32.mrf.mxu3 }
 0x129   :  { %v1057_v33 = vmax.f32 %v993_v29, 0.0  ;;  %v864_v34 = vadd.f32 %v863_v31, %v694_v30  ;;  %v617_v35 = vpop.f32.mrf.mxu0 }
 0x12a   :  { %v786_v36 = vpop.f32.mrf.mxu1 }
 0x12b   :  { %v1692_v38 = vpack.c.bf16 %v1057_v33, %v1056_v32  ;;  %v957_v39 = vmul.f32 %v2004_v63, %v864_v34  ;;  %v787_v41 = vadd.f32 %v786_v36, %v617_v35 }
 0x12d   :  { %1820 = vst [vmem:[#allocation7 + $0x38] sm:$0xff] %v1692_v38   ;;  %v1025_v40 = vadd.f32 %v2010_v3, %v957_v39  ;;  %v926_v47 = vmul.f32 %v2004_v63, %v787_v41 }
 0x12f   :  { %v1089_v43 = vmax.f32 %v1025_v40, 0.0  ;;  %v697_v44 = vpop.f32.mrf.mxu2  ;;  %v994_v52 = vadd.f32 %v2010_v3, %v926_v47 }
 0x130   :  { %v866_v45 = vpop.f32.mrf.mxu3 }
 0x131   :  { %v1772_v46 = vpack.c.bf16 %v1089_v43, %v1088_v42  ;;  %v619_v48 = vpop.f32.mrf.mxu0  ;;  %v867_v50 = vadd.f32 %v866_v45, %v697_v44  ;;  %v1058_v58 = vmax.f32 %v994_v52, 0.0 }
 0x132   :  { %v788_v49 = vpop.f32.mrf.mxu1 }
 0x133   :  { %1836 = vst [vmem:[#allocation7 + $0xb8] sm:$0xff] %v1772_v46   ;;  %v789_v51 = vadd.f32 %v788_v49, %v619_v48  ;;  %v958_v54 = vmul.f32 %v2004_v63, %v867_v50 }
 0x135   :  { %v927_v53 = vmul.f32 %v2004_v63, %v789_v51  ;;  %v1026_v0 = vadd.f32 %v2010_v3, %v958_v54 }
 0x137   :  { %v995_v55 = vadd.f32 %v2010_v3, %v927_v53  ;;  %v699_v56 = vpop.f32.mrf.mxu2  ;;  %v1090_v6 = vmax.f32 %v1026_v0, 0.0 }
 0x138   :  { %v868_v57 = vpop.f32.mrf.mxu3 }
 0x139   :  { %v1059_v59 = vmax.f32 %v995_v55, 0.0  ;;  %v869_v60 = vadd.f32 %v868_v57, %v699_v56  ;;  %v622_v61 = vpop.f32.mrf.mxu0 }
 0x13a   :  { %v791_v62 = vpop.f32.mrf.mxu1 }
 0x13b   :  { %v1697_v1 = vpack.c.bf16 %v1059_v59, %v1058_v58  ;;  %v959_v2 = vmul.f32 %v2004_v63, %v869_v60  ;;  %v792_v5 = vadd.f32 %v791_v62, %v622_v61 }
 0x13d   :  { %1821 = vst [vmem:[#allocation7 + $0x40] sm:$0xff] %v1697_v1   ;;  %v1027_v4 = vadd.f32 %v2010_v3, %v959_v2  ;;  %v928_v11 = vmul.f32 %v2004_v63, %v792_v5 }
 0x13f   :  { %v1091_v7 = vmax.f32 %v1027_v4, 0.0  ;;  %v702_v8 = vpop.f32.mrf.mxu2  ;;  %v996_v16 = vadd.f32 %v2010_v3, %v928_v11 }
 0x140   :  { %v871_v9 = vpop.f32.mrf.mxu3 }
 0x141   :  { %v1777_v10 = vpack.c.bf16 %v1091_v7, %v1090_v6  ;;  %v624_v12 = vpop.f32.mrf.mxu0  ;;  %v872_v14 = vadd.f32 %v871_v9, %v702_v8  ;;  %v1060_v22 = vmax.f32 %v996_v16, 0.0 }
 0x142   :  { %v793_v13 = vpop.f32.mrf.mxu1 }
 0x143   :  { %1837 = vst [vmem:[#allocation7 + $0xc0] sm:$0xff] %v1777_v10   ;;  %v794_v15 = vadd.f32 %v793_v13, %v624_v12  ;;  %v960_v18 = vmul.f32 %v2004_v63, %v872_v14 }
 0x145   :  { %v929_v17 = vmul.f32 %v2004_v63, %v794_v15  ;;  %v1028_v27 = vadd.f32 %v2010_v3, %v960_v18 }
 0x147   :  { %v997_v19 = vadd.f32 %v2010_v3, %v929_v17  ;;  %v704_v20 = vpop.f32.mrf.mxu2  ;;  %v1092_v32 = vmax.f32 %v1028_v27, 0.0 }
 0x148   :  { %v873_v21 = vpop.f32.mrf.mxu3 }
 0x149   :  { %v1061_v23 = vmax.f32 %v997_v19, 0.0  ;;  %v874_v24 = vadd.f32 %v873_v21, %v704_v20  ;;  %v627_v25 = vpop.f32.mrf.mxu0 }
 0x14a   :  { %v796_v26 = vpop.f32.mrf.mxu1 }
 0x14b   :  { %v1702_v28 = vpack.c.bf16 %v1061_v23, %v1060_v22  ;;  %v961_v29 = vmul.f32 %v2004_v63, %v874_v24  ;;  %v797_v31 = vadd.f32 %v796_v26, %v627_v25 }
 0x14d   :  { %1822 = vst [vmem:[#allocation7 + $0x48] sm:$0xff] %v1702_v28   ;;  %v1029_v30 = vadd.f32 %v2010_v3, %v961_v29  ;;  %v930_v37 = vmul.f32 %v2004_v63, %v797_v31 }
 0x14f   :  { %v1093_v33 = vmax.f32 %v1029_v30, 0.0  ;;  %v707_v34 = vpop.f32.mrf.mxu2  ;;  %v998_v42 = vadd.f32 %v2010_v3, %v930_v37 }
 0x150   :  { %v876_v35 = vpop.f32.mrf.mxu3 }
 0x151   :  { %v1782_v36 = vpack.c.bf16 %v1093_v33, %v1092_v32  ;;  %v629_v38 = vpop.f32.mrf.mxu0  ;;  %v877_v40 = vadd.f32 %v876_v35, %v707_v34  ;;  %v1062_v48 = vmax.f32 %v998_v42, 0.0 }
 0x152   :  { %v798_v39 = vpop.f32.mrf.mxu1 }
 0x153   :  { %1838 = vst [vmem:[#allocation7 + $0xc8] sm:$0xff] %v1782_v36   ;;  %v799_v41 = vadd.f32 %v798_v39, %v629_v38  ;;  %v962_v44 = vmul.f32 %v2004_v63, %v877_v40 }
 0x155   :  { %v931_v43 = vmul.f32 %v2004_v63, %v799_v41  ;;  %v1030_v53 = vadd.f32 %v2010_v3, %v962_v44 }
 0x157   :  { %v999_v45 = vadd.f32 %v2010_v3, %v931_v43  ;;  %v709_v46 = vpop.f32.mrf.mxu2  ;;  %v1094_v58 = vmax.f32 %v1030_v53, 0.0 }
 0x158   :  { %v878_v47 = vpop.f32.mrf.mxu3 }
 0x159   :  { %v1063_v49 = vmax.f32 %v999_v45, 0.0  ;;  %v879_v50 = vadd.f32 %v878_v47, %v709_v46  ;;  %v632_v51 = vpop.f32.mrf.mxu0 }
 0x15a   :  { %v801_v52 = vpop.f32.mrf.mxu1 }
 0x15b   :  { %v1707_v54 = vpack.c.bf16 %v1063_v49, %v1062_v48  ;;  %v963_v55 = vmul.f32 %v2004_v63, %v879_v50  ;;  %v802_v57 = vadd.f32 %v801_v52, %v632_v51 }
 0x15d   :  { %1823 = vst [vmem:[#allocation7 + $0x50] sm:$0xff] %v1707_v54   ;;  %v1031_v56 = vadd.f32 %v2010_v3, %v963_v55  ;;  %v932_v0 = vmul.f32 %v2004_v63, %v802_v57 }
 0x15f   :  { %v1095_v59 = vmax.f32 %v1031_v56, 0.0  ;;  %v712_v60 = vpop.f32.mrf.mxu2  ;;  %v1000_v6 = vadd.f32 %v2010_v3, %v932_v0 }
 0x160   :  { %v881_v61 = vpop.f32.mrf.mxu3 }
 0x161   :  { %v1787_v62 = vpack.c.bf16 %v1095_v59, %v1094_v58  ;;  %v634_v1 = vpop.f32.mrf.mxu0  ;;  %v882_v4 = vadd.f32 %v881_v61, %v712_v60  ;;  %v1064_v12 = vmax.f32 %v1000_v6, 0.0 }
 0x162   :  { %v803_v2 = vpop.f32.mrf.mxu1 }
 0x163   :  { %1839 = vst [vmem:[#allocation7 + $0xd0] sm:$0xff] %v1787_v62   ;;  %v804_v5 = vadd.f32 %v803_v2, %v634_v1  ;;  %v964_v8 = vmul.f32 %v2004_v63, %v882_v4 }
 0x165   :  { %v933_v7 = vmul.f32 %v2004_v63, %v804_v5  ;;  %v1032_v17 = vadd.f32 %v2010_v3, %v964_v8 }
 0x167   :  { %v1001_v9 = vadd.f32 %v2010_v3, %v933_v7  ;;  %v714_v10 = vpop.f32.mrf.mxu2  ;;  %v1096_v22 = vmax.f32 %v1032_v17, 0.0 }
 0x168   :  { %v883_v11 = vpop.f32.mrf.mxu3 }
 0x169   :  { %v1065_v13 = vmax.f32 %v1001_v9, 0.0  ;;  %v884_v14 = vadd.f32 %v883_v11, %v714_v10  ;;  %v637_v15 = vpop.f32.mrf.mxu0 }
 0x16a   :  { %v806_v16 = vpop.f32.mrf.mxu1 }
 0x16b   :  { %v1712_v18 = vpack.c.bf16 %v1065_v13, %v1064_v12  ;;  %v965_v19 = vmul.f32 %v2004_v63, %v884_v14  ;;  %v807_v21 = vadd.f32 %v806_v16, %v637_v15 }
 0x16d   :  { %1824 = vst [vmem:[#allocation7 + $0x58] sm:$0xff] %v1712_v18   ;;  %v1033_v20 = vadd.f32 %v2010_v3, %v965_v19  ;;  %v934_v27 = vmul.f32 %v2004_v63, %v807_v21 }
 0x16f   :  { %v1097_v23 = vmax.f32 %v1033_v20, 0.0  ;;  %v717_v24 = vpop.f32.mrf.mxu2  ;;  %v1002_v32 = vadd.f32 %v2010_v3, %v934_v27 }
 0x170   :  { %v886_v25 = vpop.f32.mrf.mxu3 }
 0x171   :  { %v1792_v26 = vpack.c.bf16 %v1097_v23, %v1096_v22  ;;  %v639_v28 = vpop.f32.mrf.mxu0  ;;  %v887_v30 = vadd.f32 %v886_v25, %v717_v24  ;;  %v1066_v38 = vmax.f32 %v1002_v32, 0.0  ;;  %v1870_v23 = vld [vmem:[%s2141_s4] ss:$0 sm:$0xff]  ;;  %s1956_s4 = smov [#allocation7]  }
 0x172   :  { %v808_v29 = vpop.f32.mrf.mxu1 }
 0x173   :  { %1840 = vst [vmem:[#allocation7 + $0xd8] sm:$0xff] %v1792_v26   ;;  %v809_v31 = vadd.f32 %v808_v29, %v639_v28  ;;  %v966_v34 = vmul.f32 %v2004_v63, %v887_v30  ;;  %v1871_v26 = vld [vmem:[%s2142_s5] ss:$0 sm:$0xff]  ;;  %s1238_s5 = sshll.u32 %s1956_s4, 4  ;;  %s1239_s5 = int_to_ptr.vmem [resolvable:$true] %s1238_s5 }
 0x175   :  { %v935_v33 = vmul.f32 %v2004_v63, %v809_v31  ;;  %v1034_v43 = vadd.f32 %v2010_v3, %v966_v34 }
 0x177   :  { %v1003_v35 = vadd.f32 %v2010_v3, %v935_v33  ;;  %v719_v36 = vpop.f32.mrf.mxu2  ;;  %v1098_v48 = vmax.f32 %v1034_v43, 0.0 }
 0x178   :  { %v888_v37 = vpop.f32.mrf.mxu3 }
 0x179   :  { %v1067_v39 = vmax.f32 %v1003_v35, 0.0  ;;  %v889_v40 = vadd.f32 %v888_v37, %v719_v36  ;;  %v642_v41 = vpop.f32.mrf.mxu0 }
 0x17a   :  { %v811_v42 = vpop.f32.mrf.mxu1 }
 0x17b   :  { %v1717_v44 = vpack.c.bf16 %v1067_v39, %v1066_v38  ;;  %v967_v45 = vmul.f32 %v2004_v63, %v889_v40  ;;  %v812_v47 = vadd.f32 %v811_v42, %v642_v41 }
 0x17d   :  { %1825 = vst [vmem:[#allocation7 + $0x60] sm:$0xff] %v1717_v44   ;;  %v1035_v46 = vadd.f32 %v2010_v3, %v967_v45  ;;  %v936_v53 = vmul.f32 %v2004_v63, %v812_v47 }
 0x17f   :  { %v1099_v49 = vmax.f32 %v1035_v46, 0.0  ;;  %v722_v50 = vpop.f32.mrf.mxu2  ;;  %v1004_v58 = vadd.f32 %v2010_v3, %v936_v53 }
 0x180   :  { %v891_v51 = vpop.f32.mrf.mxu3 }
 0x181   :  { %v1797_v52 = vpack.c.bf16 %v1099_v49, %v1098_v48  ;;  %v644_v54 = vpop.f32.mrf.mxu0  ;;  %v892_v56 = vadd.f32 %v891_v51, %v722_v50  ;;  %v1068_v1 = vmax.f32 %v1004_v58, 0.0 }
 0x182   :  { %v813_v55 = vpop.f32.mrf.mxu1 }
 0x183   :  { %1841 = vst [vmem:[#allocation7 + $0xe0] sm:$0xff] %v1797_v52   ;;  %v814_v57 = vadd.f32 %v813_v55, %v644_v54  ;;  %v968_v60 = vmul.f32 %v2004_v63, %v892_v56 }
 0x185   :  { %v937_v59 = vmul.f32 %v2004_v63, %v814_v57  ;;  %v1036_v7 = vadd.f32 %v2010_v3, %v968_v60 }
 0x187   :  { %v1005_v61 = vadd.f32 %v2010_v3, %v937_v59  ;;  %v724_v62 = vpop.f32.mrf.mxu2  ;;  %v1100_v12 = vmax.f32 %v1036_v7, 0.0 }
 0x188   :  { %v893_v0 = vpop.f32.mrf.mxu3 }
 0x189   :  { %v1069_v2 = vmax.f32 %v1005_v61, 0.0  ;;  %v894_v4 = vadd.f32 %v893_v0, %v724_v62  ;;  %v647_v5 = vpop.f32.mrf.mxu0 }
 0x18a   :  { %v816_v6 = vpop.f32.mrf.mxu1 }
 0x18b   :  { %v1722_v8 = vpack.c.bf16 %v1069_v2, %v1068_v1  ;;  %v969_v9 = vmul.f32 %v2004_v63, %v894_v4  ;;  %v817_v11 = vadd.f32 %v816_v6, %v647_v5 }
 0x18d   :  { %1826 = vst [vmem:[#allocation7 + $0x68] sm:$0xff] %v1722_v8   ;;  %v1037_v10 = vadd.f32 %v2010_v3, %v969_v9  ;;  %v938_v17 = vmul.f32 %v2004_v63, %v817_v11 }
 0x18f   :  { %v1101_v13 = vmax.f32 %v1037_v10, 0.0  ;;  %v727_v14 = vpop.f32.mrf.mxu2  ;;  %v1006_v22 = vadd.f32 %v2010_v3, %v938_v17 }
 0x190   :  { %v896_v15 = vpop.f32.mrf.mxu3 }
 0x191   :  { %v1802_v16 = vpack.c.bf16 %v1101_v13, %v1100_v12  ;;  %v649_v18 = vpop.f32.mrf.mxu0  ;;  %v897_v20 = vadd.f32 %v896_v15, %v727_v14  ;;  %v1070_v29 = vmax.f32 %v1006_v22, 0.0 }
 0x192   :  { %v818_v19 = vpop.f32.mrf.mxu1 }
 0x193   :  { %1842 = vst [vmem:[#allocation7 + $0xe8] sm:$0xff] %v1802_v16   ;;  %v819_v21 = vadd.f32 %v818_v19, %v649_v18  ;;  %v970_v25 = vmul.f32 %v1870_v23, %v897_v20 }
 0x195   :  { %v939_v24 = vmul.f32 %v1870_v23, %v819_v21  ;;  %v1038_v34 = vadd.f32 %v1871_v26, %v970_v25 }
 0x197   :  { %v1007_v27 = vadd.f32 %v1871_v26, %v939_v24  ;;  %v729_v28 = vpop.f32.mrf.mxu2  ;;  %v1102_v38 = vmax.f32 %v1038_v34, 0.0 }
 0x198   :  { %v898_v63 = vpop.f32.mrf.mxu3 }
 0x199   :  { %v1071_v30 = vmax.f32 %v1007_v27, 0.0  ;;  %v899_v31 = vadd.f32 %v898_v63, %v729_v28  ;;  %v652_v32 = vpop.f32.mrf.mxu0 }
 0x19a   :  { %v821_v33 = vpop.f32.mrf.mxu1 }
 0x19b   :  { %v1727_v3 = vpack.c.bf16 %v1071_v30, %v1070_v29  ;;  %v971_v35 = vmul.f32 %v1870_v23, %v899_v31  ;;  %v822_v37 = vadd.f32 %v821_v33, %v652_v32 }
 0x19d   :  { %1827 = vst [vmem:[#allocation7 + $0x70] sm:$0xff] %v1727_v3   ;;  %v1039_v36 = vadd.f32 %v1871_v26, %v971_v35  ;;  %v940_v43 = vmul.f32 %v1870_v23, %v822_v37 }
 0x19f   :  { %v1103_v39 = vmax.f32 %v1039_v36, 0.0  ;;  %v732_v40 = vpop.f32.mrf.mxu2  ;;  %v1008_v48 = vadd.f32 %v1871_v26, %v940_v43 }
 0x1a0   :  { %v901_v41 = vpop.f32.mrf.mxu3 }
 0x1a1   :  { %v1807_v42 = vpack.c.bf16 %v1103_v39, %v1102_v38  ;;  %v654_v44 = vpop.f32.mrf.mxu0  ;;  %v902_v46 = vadd.f32 %v901_v41, %v732_v40  ;;  %v1072_v54 = vmax.f32 %v1008_v48, 0.0 }
 0x1a2   :  { %v823_v45 = vpop.f32.mrf.mxu1 }
 0x1a3   :  { %1843 = vst [vmem:[#allocation7 + $0xf0] sm:$0xff] %v1807_v42   ;;  %v824_v47 = vadd.f32 %v823_v45, %v654_v44  ;;  %v972_v50 = vmul.f32 %v1870_v23, %v902_v46 }
 0x1a5   :  { %v941_v49 = vmul.f32 %v1870_v23, %v824_v47  ;;  %v1040_v57 = vadd.f32 %v1871_v26, %v972_v50 }
 0x1a7   :  { %v1009_v51 = vadd.f32 %v1871_v26, %v941_v49  ;;  %v734_v52 = vpop.f32.mrf.mxu2  ;;  %v1104_v61 = vmax.f32 %v1040_v57, 0.0 }
 0x1a8   :  { %v903_v53 = vpop.f32.mrf.mxu3 }
 0x1a9   :  { %v1073_v55 = vmax.f32 %v1009_v51, 0.0  ;;  %v904_v56 = vadd.f32 %v903_v53, %v734_v52 }
 0x1ab   :  { %v1732_v58 = vpack.c.bf16 %v1073_v55, %v1072_v54  ;;  %v973_v59 = vmul.f32 %v1870_v23, %v904_v56 }
 0x1ad   :  { %1828 = vst [vmem:[#allocation7 + $0x78] sm:$0xff] %v1732_v58   ;;  %v1041_v60 = vadd.f32 %v1871_v26, %v973_v59 }
 0x1af   :  { %v1105_v62 = vmax.f32 %v1041_v60, 0.0 }
 0x1b1   :  { %v1812_v0 = vpack.c.bf16 %v1105_v62, %v1104_v61 }
 0x1b3   :  { %1844 = vst [vmem:[#allocation7 + $0xf8] sm:$0xff] %v1812_v0  }
 0x1b4   :  { %1246 = dma.vmem_to_hbm [thread:$0]  %s1239_s5, 4096, %s1241_s17, [#allocation4], %s1954_s7, %s1954_s7, %s1955_s8  }
 0x1b5   :  { %1948 = dma.done.wait [#allocation4], 4096  }
 0x1b6   :  { %1949 = vsyncadd [#allocation4], 4294963200 }
 0x1b7   :  { %1251 = vsyncpa [#allocation3], 1 }
 0x1b8   :  { %1252 = vsyncpa [#allocation6], 1 }
 0x1b9   :  { %1253 = vsyncpa [#allocation4], 1 }

</bundles_post_ra>
